<compile_context>
chip_gen: v6e
topology: v6e:2x2x1
jax: 0.10.0
libtpu: 0.0.40
codegen_flags: <defaults>
</compile_context>

<pallas_src>
import functools
import math

import jax
import jax.numpy as jnp
from jax.experimental import pallas as pl
from jax.experimental.pallas import tpu as pltpu


def _round_up(x, m):
    return ((x + m - 1) // m) * m


def _gating_kernel(x_ref, w1_ref, b1_ref, w2_ref, b2_ref, o_ref, *, activation):
    # Shapes seen per grid step:
    #   x_ref : (Tm, D)        streamed token rows (bf16 or f32)
    #   w1_ref: (D, Hp)        resident W1^T, hidden padded to a multiple of 128
    #   b1_ref: (1, Hp)  f32   (zero-padded)
    #   w2_ref: (Hp, Np)       resident W2^T, gate axis padded to a multiple of 128
    #   b2_ref: (1, Np)  f32   (pad lanes = -1e30  ->  exp() == 0)
    #   o_ref : (Tm, Np)       lane-dense softmax output (real gates in [:, :N])

    # ---- Linear 1 (MXU, f32 accumulate) + bias + activation (VPU, f32) ----
    h = jnp.dot(x_ref[...], w1_ref[...], preferred_element_type=jnp.float32)
    h = h + b1_ref[...]                       # (1, Hp) broadcasts over (Tm, Hp)
    if activation == "relu":
        h = jnp.maximum(h, 0.0)
    else:
        # TODO(synk): tanh-approximate GELU (EUP-friendly); nn.GELU() default is the
        # exact erf form (max abs difference ~1e-3 in the hidden activations).
        h = jax.nn.gelu(h, approximate=True)

    # ---- Linear 2 -> logits (gate axis already lane-dense) ----
    logits = jnp.dot(h.astype(w2_ref.dtype), w2_ref[...],
                     preferred_element_type=jnp.float32) + b2_ref[...]

    # ---- softmax over the (padded) gate axis; approx reciprocal -> EUP slot ----
    m = jnp.max(logits, axis=-1, keepdims=True)
    p = jnp.exp(logits - m)                   # padded lanes: exp(-1e30 - m) == 0
    denom = jnp.sum(p, axis=-1, keepdims=True)
    o_ref[...] = (p * pl.reciprocal(denom, approx=True)).astype(o_ref.dtype)


def _resident_spec(shape):
    """Constant-index_map BlockSpec; single-buffered when the jax version allows."""
    idx = lambda i: (0,) * len(shape)
    if hasattr(pl, "Buffered"):
        try:
            return pl.BlockSpec(shape, idx, pipeline_mode=pl.Buffered(1))
        except TypeError:  # older jax without pipeline_mode= on BlockSpec
            pass
    return pl.BlockSpec(shape, idx)


def gating_network(x, params, *, activation="relu", tile_m=512, use_bf16_matmul=True):
    """Token-wise gating network.

    x      : (B, S, D)
    params : PyTorch layouts — w1: (H, D), b1: (H,), w2: (N, H), b2: (N,)
    returns: (B, S, N) gate weights summing to 1 across the last dim.
    """
    activation = activation.lower()
    if activation not in ("relu", "gelu"):
        raise ValueError(f"Unsupported activation for GatingNetwork: {activation}")

    B, S, D = x.shape
    H, D_w = params["w1"].shape
    assert D_w == D, "w1 must be (gate_hidden, d_model)"
    N, H_w = params["w2"].shape
    assert H_w == H, "w2 must be (num_outputs, gate_hidden)"

    out_dtype = x.dtype
    mm_dtype = jnp.bfloat16 if use_bf16_matmul else jnp.float32
    x_bytes = 2 if use_bf16_matmul else 4
    w_bytes = x_bytes

    h_pad = _round_up(H, 128)
    n_pad = _round_up(N, 128)

    # ---- Host-side weight prep: transpose for the MXU, pad to lane-dense widths ----
    w1t = jnp.zeros((D, h_pad), jnp.float32)
    w1t = w1t.at[:, :H].set(jnp.asarray(params["w1"], jnp.float32).T)        # (D, Hp)
    w2t = jnp.zeros((h_pad, n_pad), jnp.float32)
    w2t = w2t.at[:H, :N].set(jnp.asarray(params["w2"], jnp.float32).T)       # (Hp, Np)
    b1 = jnp.zeros((1, h_pad), jnp.float32)
    b1 = b1.at[0, :H].set(jnp.asarray(params["b1"], jnp.float32))
    b2 = jnp.full((1, n_pad), -1e30, jnp.float32)                            # exp -> 0
    b2 = b2.at[0, :N].set(jnp.asarray(params["b2"], jnp.float32))
    w1t = w1t.astype(mm_dtype)
    w2t = w2t.astype(mm_dtype)

    # ---- Flatten tokens; cast the streamed operand host-side (halves HBM read) ----
    rows = B * S
    xf = x.reshape(rows, D).astype(mm_dtype)

    sub = 16 if use_bf16_matmul else 8          # bf16 packs (16,128) per vreg
    rows_min = _round_up(rows, sub)

    # Cap the row tile so streamed double-buffers stay well inside VMEM (v7x: 64 MiB).
    tile_m = max(_round_up(tile_m, sub), sub)
    while tile_m > sub and 2 * tile_m * (D * x_bytes + n_pad * 4) > (24 << 20):
        tile_m = max(_round_up(tile_m // 2, sub), sub)

    # Prefer >= 2 grid steps so both v7x TensorCores get work.
    if rows_min >= 2 * sub:
        tile_m_eff = min(tile_m, _round_up(rows_min // 2, sub))
    else:
        tile_m_eff = min(tile_m, rows_min)

    # Prefer a tile that divides the row count exactly — avoids a host-side jnp.pad
    # (a full extra HBM read+write of x). Fall back to padding only if the best
    # divisor would force tiny tiles.
    tm = sub
    cand = (tile_m_eff // sub) * sub
    while cand >= sub:
        if rows_min % cand == 0:
            tm = cand
            break
        cand -= sub
    if tm < min(tile_m_eff, 256):
        tm = tile_m_eff
    padded_rows = _round_up(rows_min, tm)
    if padded_rows != rows:
        xf = jnp.pad(xf, ((0, padded_rows - rows), (0, 0)))
    grid = (padded_rows // tm,)

    # Explicit VMEM budget (streams double-buffered; weights counted at 2 bufs worst case).
    need = (2 * tm * D * x_bytes
            + 2 * tm * n_pad * 4
            + 2 * (D * h_pad + h_pad * n_pad) * w_bytes
            + 2 * (h_pad + n_pad) * 4)
    vmem_limit = int(min(max(need + (8 << 20), 32 << 20), 64 << 20))

    kernel = functools.partial(_gating_kernel, activation=activation)

    out = pl.pallas_call(
        kernel,
        out_shape=jax.ShapeDtypeStruct((padded_rows, n_pad), out_dtype),
        grid_spec=pltpu.PrefetchScalarGridSpec(
            num_scalar_prefetch=0,
            grid=grid,
            in_specs=[
                pl.BlockSpec((tm, D), lambda i: (i, 0)),   # x rows (streamed, dbl-buffered)
                _resident_spec((D, h_pad)),                # W1^T (resident)
                _resident_spec((1, h_pad)),                # b1   (resident)
                _resident_spec((h_pad, n_pad)),            # W2^T (resident)
                _resident_spec((1, n_pad)),                # b2   (resident)
            ],
            out_specs=pl.BlockSpec((tm, n_pad), lambda i: (i, 0)),
        ),
        compiler_params=pltpu.CompilerParams(
            dimension_semantics=("parallel",),
            vmem_limit_bytes=vmem_limit,
        ),
    )(xf, w1t, b1, w2t, b2)

    return out[:rows, :N].reshape(B, S, N)


def gating_network_ref(x, params, *, activation="relu"):
    """Pure-JAX f32 reference matching the PyTorch module."""
    h = jnp.einsum("bsd,hd->bsh", x, params["w1"]) + params["b1"]
    if activation == "relu":
        h = jnp.maximum(h, 0.0)
    else:
        h = jax.nn.gelu(h, approximate=False)
    logits = jnp.einsum("bsh,nh->bsn", h, params["w2"]) + params["b2"]
    return jax.nn.softmax(logits, axis=-1)


def make_params(key, d_model, gate_hidden, num_outputs):
    """Deterministic synthetic parameters matching nn.Linear init ranges."""
    k1, k2, k3, k4 = jax.random.split(key, 4)
    b1 = 1.0 / math.sqrt(d_model)
    b2 = 1.0 / math.sqrt(gate_hidden)
    return {
        "w1": jax.random.uniform(k1, (gate_hidden, d_model), minval=-b1, maxval=b1,
                                 dtype=jnp.float32),
        "b1": jax.random.uniform(k2, (gate_hidden,), minval=-b1, maxval=b1,
                                 dtype=jnp.float32),
        "w2": jax.random.uniform(k3, (num_outputs, gate_hidden), minval=-b2, maxval=b2,
                                 dtype=jnp.float32),
        "b2": jax.random.uniform(k4, (num_outputs,), minval=-b2, maxval=b2,
                                 dtype=jnp.float32),
    }


if __name__ == "__main__":
    # Small shapes consistent with forward(x: (batch, seq, d_model)).
    batch, seq, d_model, gate_hidden, num_outputs = 2, 8, 32, 32, 3

    key = jax.random.PRNGKey(0)
    kx, kp = jax.random.split(key)
    x = jax.random.normal(kx, (batch, seq, d_model), dtype=jnp.float32)
    params = make_params(kp, d_model, gate_hidden, num_outputs)

    ref = gating_network_ref(x, params, activation="relu")

    # Default path: bf16 MXU operands, f32 accumulate / softmax (documented tolerance).
    out = jax.block_until_ready(gating_network(x, params, activation="relu"))
    assert out.shape == (batch, seq, num_outputs)
    assert bool(jnp.all(jnp.isfinite(out)))
    assert bool(jnp.allclose(out, ref, rtol=2e-2, atol=3e-3)), \
        float(jnp.max(jnp.abs(out - ref)))
    assert bool(jnp.allclose(jnp.sum(out, axis=-1), 1.0, atol=5e-3))

    # Exact-f32 matmul path (tighter tolerance; approx reciprocal is ~2e-4 relative).
    out32 = jax.block_until_ready(
        gating_network(x, params, activation="relu", use_bf16_matmul=False))
    assert bool(jnp.allclose(out32, ref, rtol=1e-2, atol=2e-3)), \
        float(jnp.max(jnp.abs(out32 - ref)))
    assert bool(jnp.allclose(jnp.sum(out32, axis=-1), 1.0, atol=5e-3))

    print("KERNEL_OK")
</pallas_src>

<mosaic_0001>
module attributes {stable_mosaic.version = 11 : i64} {
  func.func @_gating_kernel(%arg0: i32, %arg1: memref<16x32xbf16, #tpu.memory_space<vmem>>, %arg2: memref<32x128xbf16, #tpu.memory_space<vmem>>, %arg3: memref<1x128xf32, #tpu.memory_space<vmem>>, %arg4: memref<128x128xbf16, #tpu.memory_space<vmem>>, %arg5: memref<1x128xf32, #tpu.memory_space<vmem>>, %arg6: memref<16x128xf32, #tpu.memory_space<vmem>>) attributes {dimension_semantics = [#tpu.dimension_semantics<parallel>], iteration_bounds = array<i64: 1>, scalar_prefetch = 0 : i64, scratch_operands = 0 : i64, tpu.core_type = #tpu.core_type<tc>, window_params = [{transform_indices = @transform_0, window_bounds = array<i64: 16, 32>}, {pipeline_mode = #tpu.pipeline_mode<synchronous>, transform_indices = @transform_1, window_bounds = array<i64: 32, 128>}, {pipeline_mode = #tpu.pipeline_mode<synchronous>, transform_indices = @transform_2, window_bounds = array<i64: 1, 128>}, {pipeline_mode = #tpu.pipeline_mode<synchronous>, transform_indices = @transform_3, window_bounds = array<i64: 128, 128>}, {pipeline_mode = #tpu.pipeline_mode<synchronous>, transform_indices = @transform_4, window_bounds = array<i64: 1, 128>}, {transform_indices = @transform_5, window_bounds = array<i64: 16, 128>}]} {
    %c0 = arith.constant 0 : index
    %c0_0 = arith.constant 0 : index
    %0 = vector.load %arg1[%c0, %c0_0] : memref<16x32xbf16, #tpu.memory_space<vmem>>, vector<16x32xbf16>
    %c0_1 = arith.constant 0 : index
    %c0_2 = arith.constant 0 : index
    %1 = vector.load %arg2[%c0_1, %c0_2] : memref<32x128xbf16, #tpu.memory_space<vmem>>, vector<32x128xbf16>
    %cst = arith.constant dense<0.000000e+00> : vector<16x128xf32>
    %2 = tpu.matmul %0, %1, %cst {dimension_numbers = #tpu.dot_dimension_numbers<[1], [0], [0], [1], [0, 0, 1, 1], [], []>} : vector<16x32xbf16>, vector<32x128xbf16>, vector<16x128xf32> -> vector<16x128xf32>
    %c0_3 = arith.constant 0 : index
    %c0_4 = arith.constant 0 : index
    %3 = vector.load %arg3[%c0_3, %c0_4] : memref<1x128xf32, #tpu.memory_space<vmem>>, vector<1x128xf32>
    %4 = vector.broadcast %3 : vector<1x128xf32> to vector<16x128xf32>
    %5 = arith.addf %2, %4 : vector<16x128xf32>
    %cst_5 = arith.constant 0.000000e+00 : f32
    %6 = vector.broadcast %cst_5 : f32 to vector<16x128xf32>
    %7 = arith.maximumf %5, %6 : vector<16x128xf32>
    %8 = arith.truncf %7 : vector<16x128xf32> to vector<16x128xbf16>
    %c0_6 = arith.constant 0 : index
    %c0_7 = arith.constant 0 : index
    %9 = vector.load %arg4[%c0_6, %c0_7] : memref<128x128xbf16, #tpu.memory_space<vmem>>, vector<128x128xbf16>
    %cst_8 = arith.constant dense<0.000000e+00> : vector<16x128xf32>
    %10 = tpu.matmul %8, %9, %cst_8 {dimension_numbers = #tpu.dot_dimension_numbers<[1], [0], [0], [1], [0, 0, 1, 1], [], []>} : vector<16x128xbf16>, vector<128x128xbf16>, vector<16x128xf32> -> vector<16x128xf32>
    %c0_9 = arith.constant 0 : index
    %c0_10 = arith.constant 0 : index
    %11 = vector.load %arg5[%c0_9, %c0_10] : memref<1x128xf32, #tpu.memory_space<vmem>>, vector<1x128xf32>
    %12 = vector.broadcast %11 : vector<1x128xf32> to vector<16x128xf32>
    %13 = arith.addf %10, %12 : vector<16x128xf32>
    %cst_11 = arith.constant dense<0xFF800000> : vector<16xf32>
    %14 = vector.multi_reduction <maximumf>, %13, %cst_11 [1] : vector<16x128xf32> to vector<16xf32>
    %15 = vector.shape_cast %14 : vector<16xf32> to vector<16x1xf32>
    %16 = vector.broadcast %15 : vector<16x1xf32> to vector<16x128xf32>
    %17 = arith.subf %13, %16 : vector<16x128xf32>
    %18 = math.exp %17 : vector<16x128xf32>
    %cst_12 = arith.constant dense<0.000000e+00> : vector<16xf32>
    %19 = vector.multi_reduction <add>, %18, %cst_12 [1] : vector<16x128xf32> to vector<16xf32>
    %20 = vector.shape_cast %19 : vector<16xf32> to vector<16x1xf32>
    %21 = tpu.reciprocal %20 {approx = true} : vector<16x1xf32> -> vector<16x1xf32>
    %22 = vector.broadcast %21 : vector<16x1xf32> to vector<16x128xf32>
    %23 = arith.mulf %18, %22 : vector<16x128xf32>
    %c0_13 = arith.constant 0 : index
    %c0_14 = arith.constant 0 : index
    %24 = vector.load %arg6[%c0_13, %c0_14] : memref<16x128xf32, #tpu.memory_space<vmem>>, vector<16x128xf32>
    tpu.vector_store %arg6[%c0_13, %c0_14], %23 {strides = array<i32>} : memref<16x128xf32, #tpu.memory_space<vmem>>, vector<16x128xf32>,
    return
  }
  func.func @transform_0(%arg0: i32) -> (i32, i32) {
    %c0_i32 = arith.constant 0 : i32
    %c0_i32_0 = arith.constant 0 : i32
    return %arg0, %c0_i32 : i32, i32
  }
  func.func @transform_1(%arg0: i32) -> (i32, i32) {
    %c0_i32 = arith.constant 0 : i32
    %c0_i32_0 = arith.constant 0 : i32
    %c0_i32_1 = arith.constant 0 : i32
    return %c0_i32, %c0_i32_0 : i32, i32
  }
  func.func @transform_2(%arg0: i32) -> (i32, i32) {
    %c0_i32 = arith.constant 0 : i32
    %c0_i32_0 = arith.constant 0 : i32
    %c0_i32_1 = arith.constant 0 : i32
    return %c0_i32, %c0_i32_0 : i32, i32
  }
  func.func @transform_3(%arg0: i32) -> (i32, i32) {
    %c0_i32 = arith.constant 0 : i32
    %c0_i32_0 = arith.constant 0 : i32
    %c0_i32_1 = arith.constant 0 : i32
    return %c0_i32, %c0_i32_0 : i32, i32
  }
  func.func @transform_4(%arg0: i32) -> (i32, i32) {
    %c0_i32 = arith.constant 0 : i32
    %c0_i32_0 = arith.constant 0 : i32
    %c0_i32_1 = arith.constant 0 : i32
    return %c0_i32, %c0_i32_0 : i32, i32
  }
  func.func @transform_5(%arg0: i32) -> (i32, i32) {
    %c0_i32 = arith.constant 0 : i32
    %c0_i32_0 = arith.constant 0 : i32
    return %arg0, %c0_i32 : i32, i32
  }
}

</mosaic_0001>

<bundles_post_ra>
// kernel: tpu_custom_call.1
= control target key start
LH: loop header
LB: loop body
LE: loop exit
PB: predicated region body
PF: predicated region fallthrough
CT: control target
= control target key end

     0   :  { %10 = vsyncpa [#allocation3], 0  ;;  %s518_s0 = inlined_call_operand.hbm [shape: bf16[16,32], index: 0, kind: input, shape index: {}]   ;;  %s519_s1 = inlined_call_operand.hbm [shape: bf16[32,128], index: 1, kind: input, shape index: {}]   ;;  %s520_s2 = inlined_call_operand.vmem [shape: f32[1,128], index: 2, kind: input, shape index: {}]   ;;  %s521_s3 = inlined_call_operand.hbm [shape: bf16[128,128], index: 3, kind: input, shape index: {}]   ;;  %s522_s4 = inlined_call_operand.vmem [shape: f32[1,128], index: 4, kind: input, shape index: {}]   ;;  %s523_s5 = inlined_call_operand.hbm [shape: f32[16,128], index: 5, kind: output, shape index: {}]  }
   0x1   :  { %11 = vsyncpa [#allocation6], 0 }
   0x2   :  { %12 = vsyncpa [#allocation4], 0  ;;  %s460_s18 = smov [#allocation5]   ;;  %s461_s20 = smov [#allocation2]  }
   0x3   :  { %s30_s19 = sshll.u32 %s460_s18, 4  ;;  %s18_s21 = sshll.u32 %s461_s20, 4  ;;  %s31_s19 = int_to_ptr.vmem [resolvable:$true] %s30_s19  ;;  %s19_s21 = int_to_ptr.vmem [resolvable:$true] %s18_s21 }
   0x4   :  { %s382_s22 = scalar_lea.vmem %s31_s19, 256  ;;  %p387_p1 = scmp.lt.s32.totalorder %s31_s19, %s31_s19 }
   0x5   :  { %p383_p0 = scmp.ne.s32.totalorder %s31_s19, %s382_s22  ;;  %p388_p2 = scmp.lt.s32.totalorder %s382_s22, %s382_s22 }
   0x7   :  { %p389_p3 = por %p388_p2, %p387_p1 }
   0x9   :  { %p390_p4 = pnand %p389_p3, %p383_p0 }
   0xb   :  { %393 = shalt.err (!%p390_p4)
}
   0xc   :  { %s462_s23 = smov 64   ;;  %s463_s24 = smov 4  }
   0xd   :  { %36 = dma.hbm_to_vmem [thread:$0]  %s519_s1, 256, %s31_s19, [#allocation6], %s462_s23, %s462_s23, %s463_s24  }
   0xe   :  { %s402_s27 = scalar_lea.vmem %s19_s21, 128  ;;  %p407_p6 = scmp.lt.s32.totalorder %s19_s21, %s19_s21 }
   0xf   :  { %p403_p5 = scmp.ne.s32.totalorder %s19_s21, %s402_s27  ;;  %p408_p7 = scmp.lt.s32.totalorder %s402_s27, %s402_s27 }
  0x11   :  { %p409_p8 = por %p408_p7, %p407_p6 }
  0x13   :  { %p410_p9 = pnand %p409_p8, %p403_p5 }
  0x15   :  { %413 = shalt.err (!%p410_p9)
}
  0x16   :  { %24 = dma.hbm_to_vmem [thread:$0]  %s518_s0, 128, %s19_s21, [#allocation3], %s462_s23, %s462_s23, %s463_s24  }
  0x17   :  { %s464_s30 = smov [#allocation7]  }
  0x18   :  { %s44_s6 = sshll.u32 %s464_s30, 4  ;;  %s45_s6 = int_to_ptr.vmem [resolvable:$true] %s44_s6 }
  0x19   :  { %s422_s7 = scalar_lea.vmem %s45_s6, 1024  ;;  %p427_p11 = scmp.lt.s32.totalorder %s45_s6, %s45_s6 }
  0x1a   :  { %p423_p10 = scmp.ne.s32.totalorder %s45_s6, %s422_s7  ;;  %p428_p12 = scmp.lt.s32.totalorder %s422_s7, %s422_s7 }
  0x1c   :  { %p429_p13 = por %p428_p12, %p427_p11 }
  0x1e   :  { %p430_p0 = pnand %p429_p13, %p423_p10 }
  0x20   :  { %433 = shalt.err (!%p430_p0)
}
  0x21   :  { %50 = dma.hbm_to_vmem [thread:$0]  %s521_s3, 1024, %s45_s6, [#allocation6], %s462_s23, %s462_s23, %s463_s24  }
  0x22   :  { %454 = dma.done.wait [#allocation3], 128  }
  0x23   :  { %455 = vsyncadd [#allocation3], 4294967168 }
  0x24   :  { %456 = dma.done.wait [#allocation6], 1280  }
  0x25   :  { %457 = vsyncadd [#allocation6], 4294966016  ;;  %v465_v0 = vmov 0.0   ;;  %vm466_vm0 = vmmov 0   ;;  %v355_v1 = vld [vmem:[#allocation5 + $0x8] sm:$0xff]   ;;  %v356_v2 = vld [vmem:[#allocation5] sm:$0xff]  }
  0x26   :  { %317 = vmatprep.subr.bf16.mxu0 %v465_v0  ;;  %321 = vmatprep.mubr.msk.bf16.mxu0 %vm466_vm0, %v465_v0  ;;  %v358_v3 = vld [vmem:[#allocation7 + $0x38] sm:$0xff]   ;;  %v357_v4 = vld [vmem:[#allocation2] sm:$0xff]   ;;  %v359_v5 = vld [vmem:[#allocation7 + $0x30] sm:$0xff]   ;;  %vm93_vm1 = vcmask 261120  }
  0x27   :  { %325 = vmatprep.subr.bf16.mxu1 %v465_v0  ;;  %341 = vmatprep.mubr.msk.bf16.mxu1 %vm466_vm0, %v465_v0  ;;  %v360_v6 = vld [vmem:[#allocation7 + $0x28] sm:$0xff]   ;;  %v361_v7 = vld [vmem:[#allocation7 + $0x20] sm:$0xff]   ;;  %v362_v8 = vld [vmem:[#allocation7 + $0x18] sm:$0xff]  }
  0x28   :  { %318 = vmatpush3.bf16.msra.mxu0 %v355_v1  ;;  %326 = vmatpush3.bf16.msra.mxu1 %v358_v3  ;;  %v363_v9 = vld [vmem:[#allocation7 + $0x10] sm:$0xff]   ;;  %v364_v10 = vld [vmem:[#allocation7 + $0x8] sm:$0xff]   ;;  %v365_v11 = vld [vmem:[#allocation7] sm:$0xff]  }
  0x29   :  { %319 = vmatprep.subr.bf16.mxu0 %v465_v0  ;;  %327 = vmatprep.subr.bf16.mxu1 %v465_v0  ;;  %v291_v12 = vld [vmem:[%s520_s2] ss:$0 sm:$0xff]  ;;  %s467_s2 = smov [#allocation8]  }
  0x2a   :  { %v296_v22 = vld [vmem:[%s522_s4] ss:$0 sm:$0xff]  ;;  %s278_s4 = sshll.u32 %s467_s2, 4  ;;  %s279_s4 = int_to_ptr.vmem [resolvable:$true] %s278_s4 }
  0x2b   :  { %s434_s11 = scalar_lea.vmem %s279_s4, 256  ;;  %p439_p2 = scmp.lt.s32.totalorder %s279_s4, %s279_s4 }
  0x2c   :  { %320 = vmatpush3.bf16.msra.mxu0 %v356_v2  ;;  %328 = vmatpush3.bf16.msra.mxu1 %v359_v5  ;;  %p435_p1 = scmp.ne.s32.totalorder %s279_s4, %s434_s11  ;;  %p440_p3 = scmp.lt.s32.totalorder %s434_s11, %s434_s11 }
  0x2d   :  { %329 = vmatprep.subr.bf16.mxu1 %v465_v0 }
  0x2e   :  { %p441_p4 = por %p440_p3, %p439_p2 }
  0x2f   :  { %322 = vmatmul.mubr.msk.bf16.vlgmr.msra.gmra.mxu0 %vm93_vm1, %v357_v4 }
  0x30   :  { %330 = vmatpush3.bf16.msra.mxu1 %v360_v6  ;;  %p442_p5 = pnand %p441_p4, %p435_p1 }
  0x31   :  { %331 = vmatprep.subr.bf16.mxu1 %v465_v0 }
  0x34   :  { %332 = vmatpush3.bf16.msra.mxu1 %v361_v7 }
  0x35   :  { %333 = vmatprep.subr.bf16.mxu1 %v465_v0 }
  0x38   :  { %334 = vmatpush3.bf16.msra.mxu1 %v362_v8 }
  0x39   :  { %335 = vmatprep.subr.bf16.mxu1 %v465_v0 }
  0x3c   :  { %336 = vmatpush3.bf16.msra.mxu1 %v363_v9 }
  0x3d   :  { %337 = vmatprep.subr.bf16.mxu1 %v465_v0 }
  0x40   :  { %338 = vmatpush3.bf16.msra.mxu1 %v364_v10 }
  0x41   :  { %339 = vmatprep.subr.bf16.mxu1 %v465_v0 }
  0x44   :  { %340 = vmatpush3.bf16.msra.mxu1 %v365_v11 }
  0xef   :  { %v131_v13 = vpop.f32.mrf.mxu0 }
  0xf0   :  { %v132_v15 = vadd.f32 %v291_v12, %v131_v13 }
  0xf1   :  { %v323_v14 = vpop.f32.mrf.mxu0 }
  0xf2   :  { %v138_v19 = vmax.f32 %v132_v15, 0.0 }
  0xf3   :  { %v134_v16 = vpop.f32.mrf.mxu0 }
  0xf4   :  { %v135_v17 = vadd.f32 %v291_v12, %v134_v16 }
  0xf5   :  { %v324_v18 = vpop.f32.mrf.mxu0 }
  0xf6   :  { %v139_v20 = vmax.f32 %v135_v17, 0.0 }
  0xf8   :  { %v140_v21 = vpack.c.bf16 %v139_v20, %v138_v19 }
  0xfa   :  { %342 = vmatmul.mubr.bf16.vlgmr.msra.gmra.mxu1 %v140_v21 }
 0x1ba   :  { %v246_v23 = vpop.f32.mrf.mxu1 }
 0x1bb   :  { %v247_v24 = vadd.f32 %v296_v22, %v246_v23 }
 0x1bc   :  { %v343_v25 = vpop.f32.mrf.mxu1 }
 0x1bd   :  { %253 = vmax.xlane.f32.xlu0 %v247_v24 }
 0x1be   :  { %v249_v26 = vpop.f32.mrf.mxu1 }
 0x1bf   :  { %v250_v27 = vadd.f32 %v296_v22, %v249_v26 }
 0x1c0   :  { %v344_v28 = vpop.f32.mrf.mxu1 }
 0x1c1   :  { %255 = vmax.xlane.f32.xlu0 %v250_v27 }
 0x246   :  { %v254_v29 = vpop.xlane.xlu0 %253 }
 0x247   :  { %v257_v30 = vsub.f32 %v247_v24, %v254_v29 }
 0x249   :  { %v259_v31 = vmul.f32 1.442695, %v257_v30 }
 0x24a   :  { %v256_v32 = vpop.xlane.xlu0 %255 }
 0x24b   :  { %366 = vpow2.f32 %v259_v31  ;;  %v258_v33 = vsub.f32 %v250_v27, %v256_v32 }
 0x24d   :  { %v261_v34 = vmul.f32 1.442695, %v258_v33 }
 0x24f   :  { %368 = vpow2.f32 %v261_v34 }
 0x258   :  { %v367_v35 = vpop.eup %366 }
 0x259   :  { %263 = vadd.xlane.f32.xlu1 %v367_v35 }
 0x25c   :  { %v369_v36 = vpop.eup %368 }
 0x25d   :  { %265 = vadd.xlane.f32.xlu1 %v369_v36 }
 0x2e2   :  { %v264_v37 = vpop.xlane.xlu1 %263 }
 0x2e3   :  { %370 = vrcp.f32 %v264_v37 }
 0x2e6   :  { %v266_v38 = vpop.xlane.xlu1 %265 }
 0x2e7   :  { %372 = vrcp.f32 %v266_v38 }
 0x2f0   :  { %v371_v39 = vpop.eup %370 }
 0x2f1   :  { %v269_v40 = vmul.f32 %v371_v39, %v367_v35 }
 0x2f3   :  { %271 = vst [vmem:[#allocation8] sm:$0xff] %v269_v40 }
 0x2f4   :  { %v373_v41 = vpop.eup %372 }
 0x2f5   :  { %v270_v42 = vmul.f32 %v373_v41, %v369_v36 }
 0x2f7   :  { %272 = vst [vmem:[#allocation8 + $0x8] sm:$0xff] %v270_v42 }
 0x2f8   :  { %445 = shalt.err (!%p442_p5)
}
 0x2f9   :  { %s468_s12 = smov 128   ;;  %s469_s13 = smov 8  }
 0x2fa   :  { %284 = dma.vmem_to_hbm [thread:$0]  %s279_s4, 256, %s523_s5, [#allocation4], %s468_s12, %s468_s12, %s469_s13  }
 0x2fb   :  { %458 = dma.done.wait [#allocation4], 256  }
 0x2fc   :  { %459 = vsyncadd [#allocation4], 4294967040 }
 0x2fd   :  { %288 = vsyncpa [#allocation3], 1 }
 0x2fe   :  { %289 = vsyncpa [#allocation6], 1 }
 0x2ff   :  { %290 = vsyncpa [#allocation4], 1 }

</bundles_post_ra>
